<compile_context>
chip_gen: v7x
topology: tpu7x:2x2x1
jax: 0.10.0
libtpu: 0.0.40
codegen_flags: <defaults>
</compile_context>

<pallas_src>
import functools

import jax
import jax.numpy as jnp
from jax.experimental import pallas as pl
from jax.experimental.pallas import tpu as pltpu


def deepnet_kernel(x_ref, w1_ref, w2_ref, w3_ref, w4_ref, b_ref, o_ref):
    # x:  (B, D_in)
    # wK: (in_K, out_K)   -- pre-transposed once at parameter-prep time
    # b:  (4, BW) packed biases, row k = bias of fc{k+1}, zero-padded to BW lanes
    H0 = w1_ref.shape[1]
    H1 = w2_ref.shape[1]
    H2 = w3_ref.shape[1]
    D_out = w4_ref.shape[1]

    x = x_ref[...]

    h = jnp.dot(x, w1_ref[...], preferred_element_type=jnp.float32) + b_ref[0:1, :H0]
    h = jnp.maximum(h, 0.0)
    # TODO(synk): training-mode dropout after fc1 (eval mode => identity)

    h = jnp.dot(h, w2_ref[...], preferred_element_type=jnp.float32) + b_ref[1:2, :H1]
    h = jnp.maximum(h, 0.0)
    # TODO(synk): training-mode dropout after fc2 (eval mode => identity)

    h = jnp.dot(h, w3_ref[...], preferred_element_type=jnp.float32) + b_ref[2:3, :H2]
    h = jnp.maximum(h, 0.0)

    out = jnp.dot(h, w4_ref[...], preferred_element_type=jnp.float32) + b_ref[3:4, :D_out]
    o_ref[...] = out.astype(o_ref.dtype)
    # TODO(synk): bn=True branch (BatchNorm1d) not implemented.


def prepare_deepnet_params(w1, b1, w2, b2, w3, b3, w4, b4):
    """One-time parameter preparation (do NOT call per forward).

    PyTorch-style weights (out_features, in_features) are transposed to
    (in, out) so the MXU sees plain x @ W, and the four bias vectors are
    packed into a single lane-aligned (4, BW) buffer (one DMA instead of four).
    """
    widths = (w1.shape[0], w2.shape[0], w3.shape[0], w4.shape[0])
    bw = ((max(widths) + 127) // 128) * 128  # lane-align packed bias rows

    def pad(b):
        return jnp.pad(b.astype(jnp.float32), (0, bw - b.shape[0]))

    return {
        "w1": jnp.asarray(w1).T, "w2": jnp.asarray(w2).T,
        "w3": jnp.asarray(w3).T, "w4": jnp.asarray(w4).T,
        "b": jnp.stack([pad(b1), pad(b2), pad(b3), pad(b4)], axis=0),
    }


@jax.jit
def deepnet_forward(x, params):
    """Eval-mode DeepNet forward (bn=False). `params` from prepare_deepnet_params."""
    B, D_in = x.shape
    w1, w2, w3, w4, b = params["w1"], params["w2"], params["w3"], params["w4"], params["b"]
    H0, H1, H2, D_out = w1.shape[1], w2.shape[1], w3.shape[1], w4.shape[1]

    flops = 2 * B * (D_in * H0 + H0 * H1 + H1 * H2 + H2 * D_out)
    bytes_accessed = 4 * (x.size + w1.size + w2.size + w3.size + w4.size
                          + b.size + B * D_out)

    vmem_spec = lambda: pl.BlockSpec(memory_space=pltpu.MemorySpace.VMEM)

    return pl.pallas_call(
        deepnet_kernel,
        out_shape=jax.ShapeDtypeStruct((B, D_out), x.dtype),
        in_specs=[vmem_spec() for _ in range(6)],
        out_specs=vmem_spec(),
        cost_estimate=pl.CostEstimate(
            flops=flops, transcendentals=0, bytes_accessed=bytes_accessed),
    )(x, w1, w2, w3, w4, b)
    # TODO(synk): for large B (>=512), tile the batch with grid=(B//TM,) using
    # TM in the 512-2048 range, constant index_maps on the weights (they stay
    # VMEM-resident), dimension_semantics=("parallel",) for v7x's two
    # TensorCores, and bf16 dot inputs (keep f32 accumulation) for native MXU
    # throughput on v5e/v6e/v7x.


if __name__ == "__main__":
    # Small shapes consistent with the module:
    # batch=8, D_in=32, HS=[128, 64, 32], D_out=16, bn=False, eval-mode dropout.
    B, D_in, D_out = 8, 32, 16
    HS = (128, 64, 32)

    key = jax.random.PRNGKey(0)
    kx, kw1, kb1, kw2, kb2, kw3, kb3, kw4, kb4 = jax.random.split(key, 9)

    x = jax.random.normal(kx, (B, D_in), dtype=jnp.float32)

    # DeepNet._init_weights: uniform(-0.01, 0.01) for every parameter.
    def u(k, shape):
        return jax.random.uniform(k, shape, jnp.float32, -0.01, 0.01)

    w1 = u(kw1, (HS[0], D_in)); b1 = u(kb1, (HS[0],))
    w2 = u(kw2, (HS[1], HS[0])); b2 = u(kb2, (HS[1],))
    w3 = u(kw3, (HS[2], HS[1])); b3 = u(kb3, (HS[2],))
    w4 = u(kw4, (D_out, HS[2])); b4 = u(kb4, (D_out,))

    # One-time prep (cached across calls), then jitted forward.
    params = prepare_deepnet_params(w1, b1, w2, b2, w3, b3, w4, b4)
    params = jax.tree_util.tree_map(jax.block_until_ready, params)

    out = deepnet_forward(x, params)
    out = jax.block_until_ready(out)

    # Pure-JAX reference (eval mode: dropout = identity, bn=False).
    h = jnp.maximum(x @ w1.T + b1, 0.0)
    h = jnp.maximum(h @ w2.T + b2, 0.0)
    h = jnp.maximum(h @ w3.T + b3, 0.0)
    ref = h @ w4.T + b4

    assert out.shape == (B, D_out)
    assert jnp.allclose(out, ref, atol=1e-5, rtol=1e-5), "mismatch vs reference"

    print("KERNEL_OK")
</pallas_src>

<mosaic_0001>
module attributes {stable_mosaic.version = 11 : i64} {
  func.func @deepnet_kernel(%arg0: memref<8x32xf32, #tpu.memory_space<vmem>>, %arg1: memref<32x128xf32, #tpu.memory_space<vmem>>, %arg2: memref<128x64xf32, #tpu.memory_space<vmem>>, %arg3: memref<64x32xf32, #tpu.memory_space<vmem>>, %arg4: memref<32x16xf32, #tpu.memory_space<vmem>>, %arg5: memref<4x128xf32, #tpu.memory_space<vmem>>, %arg6: memref<8x16xf32, #tpu.memory_space<vmem>>) attributes {dimension_semantics = [], scalar_prefetch = 0 : i64, scratch_operands = 0 : i64, tpu.core_type = #tpu.core_type<tc>} {
    %c0 = arith.constant 0 : index
    %c0_0 = arith.constant 0 : index
    %0 = vector.load %arg0[%c0, %c0_0] : memref<8x32xf32, #tpu.memory_space<vmem>>, vector<8x32xf32>
    %c0_1 = arith.constant 0 : index
    %c0_2 = arith.constant 0 : index
    %1 = vector.load %arg1[%c0_1, %c0_2] : memref<32x128xf32, #tpu.memory_space<vmem>>, vector<32x128xf32>
    %cst = arith.constant dense<0.000000e+00> : vector<8x128xf32>
    %2 = tpu.matmul %0, %1, %cst {dimension_numbers = #tpu.dot_dimension_numbers<[1], [0], [0], [1], [0, 0, 1, 1], [], []>} : vector<8x32xf32>, vector<32x128xf32>, vector<8x128xf32> -> vector<8x128xf32>
    %c0_3 = arith.constant 0 : index
    %c0_4 = arith.constant 0 : index
    %3 = vector.load %arg5[%c0_3, %c0_4] : memref<4x128xf32, #tpu.memory_space<vmem>>, vector<1x128xf32>
    %4 = vector.broadcast %3 : vector<1x128xf32> to vector<8x128xf32>
    %5 = arith.addf %2, %4 : vector<8x128xf32>
    %cst_5 = arith.constant 0.000000e+00 : f32
    %6 = vector.broadcast %cst_5 : f32 to vector<8x128xf32>
    %7 = arith.maximumf %5, %6 : vector<8x128xf32>
    %c0_6 = arith.constant 0 : index
    %c0_7 = arith.constant 0 : index
    %8 = vector.load %arg2[%c0_6, %c0_7] : memref<128x64xf32, #tpu.memory_space<vmem>>, vector<128x64xf32>
    %cst_8 = arith.constant dense<0.000000e+00> : vector<8x64xf32>
    %9 = tpu.matmul %7, %8, %cst_8 {dimension_numbers = #tpu.dot_dimension_numbers<[1], [0], [0], [1], [0, 0, 1, 1], [], []>} : vector<8x128xf32>, vector<128x64xf32>, vector<8x64xf32> -> vector<8x64xf32>
    %c1 = arith.constant 1 : index
    %c0_9 = arith.constant 0 : index
    %10 = vector.load %arg5[%c1, %c0_9] : memref<4x128xf32, #tpu.memory_space<vmem>>, vector<1x64xf32>
    %11 = vector.broadcast %10 : vector<1x64xf32> to vector<8x64xf32>
    %12 = arith.addf %9, %11 : vector<8x64xf32>
    %cst_10 = arith.constant 0.000000e+00 : f32
    %13 = vector.broadcast %cst_10 : f32 to vector<8x64xf32>
    %14 = arith.maximumf %12, %13 : vector<8x64xf32>
    %c0_11 = arith.constant 0 : index
    %c0_12 = arith.constant 0 : index
    %15 = vector.load %arg3[%c0_11, %c0_12] : memref<64x32xf32, #tpu.memory_space<vmem>>, vector<64x32xf32>
    %cst_13 = arith.constant dense<0.000000e+00> : vector<8x32xf32>
    %16 = tpu.matmul %14, %15, %cst_13 {dimension_numbers = #tpu.dot_dimension_numbers<[1], [0], [0], [1], [0, 0, 1, 1], [], []>} : vector<8x64xf32>, vector<64x32xf32>, vector<8x32xf32> -> vector<8x32xf32>
    %c2 = arith.constant 2 : index
    %c0_14 = arith.constant 0 : index
    %17 = vector.load %arg5[%c2, %c0_14] : memref<4x128xf32, #tpu.memory_space<vmem>>, vector<1x32xf32>
    %18 = vector.broadcast %17 : vector<1x32xf32> to vector<8x32xf32>
    %19 = arith.addf %16, %18 : vector<8x32xf32>
    %cst_15 = arith.constant 0.000000e+00 : f32
    %20 = vector.broadcast %cst_15 : f32 to vector<8x32xf32>
    %21 = arith.maximumf %19, %20 : vector<8x32xf32>
    %c0_16 = arith.constant 0 : index
    %c0_17 = arith.constant 0 : index
    %22 = vector.load %arg4[%c0_16, %c0_17] : memref<32x16xf32, #tpu.memory_space<vmem>>, vector<32x16xf32>
    %cst_18 = arith.constant dense<0.000000e+00> : vector<8x16xf32>
    %23 = tpu.matmul %21, %22, %cst_18 {dimension_numbers = #tpu.dot_dimension_numbers<[1], [0], [0], [1], [0, 0, 1, 1], [], []>} : vector<8x32xf32>, vector<32x16xf32>, vector<8x16xf32> -> vector<8x16xf32>
    %c3 = arith.constant 3 : index
    %c0_19 = arith.constant 0 : index
    %24 = vector.load %arg5[%c3, %c0_19] : memref<4x128xf32, #tpu.memory_space<vmem>>, vector<1x16xf32>
    %25 = vector.broadcast %24 : vector<1x16xf32> to vector<8x16xf32>
    %26 = arith.addf %23, %25 : vector<8x16xf32>
    %c0_20 = arith.constant 0 : index
    %c0_21 = arith.constant 0 : index
    %27 = vector.load %arg6[%c0_20, %c0_21] : memref<8x16xf32, #tpu.memory_space<vmem>>, vector<8x16xf32>
    tpu.vector_store %arg6[%c0_20, %c0_21], %26 {strides = array<i32>} : memref<8x16xf32, #tpu.memory_space<vmem>>, vector<8x16xf32>,
    return
  }
}

</mosaic_0001>

<bundles_post_ra>
// kernel: deepnet_forward.1
= control target key start
LH: loop header
LB: loop body
LE: loop exit
PB: predicated region body
PF: predicated region fallthrough
CT: control target
= control target key end

     0   :  { %v582_v3 = vmov 0.0|0.0   ;;  %vm583_vm0 = vmmov 0   ;;  %v584_v6 = vmov 0.0   ;;  %s770_s0 = inlined_call_operand.vmem [shape: f32[8,32], index: 0, kind: input, shape index: {}]   ;;  %s771_s1 = inlined_call_operand.vmem [shape: f32[32,128], index: 1, kind: input, shape index: {}]   ;;  %s772_s2 = inlined_call_operand.vmem [shape: f32[128,64], index: 2, kind: input, shape index: {}]   ;;  %s773_s3 = inlined_call_operand.vmem [shape: f32[64,32], index: 3, kind: input, shape index: {}]   ;;  %s774_s4 = inlined_call_operand.vmem [shape: f32[32,16], index: 4, kind: input, shape index: {}]   ;;  %s775_s5 = inlined_call_operand.vmem [shape: f32[4,128], index: 5, kind: input, shape index: {}]   ;;  %s776_s6 = inlined_call_operand.hbm [shape: f32[8,16], index: 6, kind: output, shape index: {}]  }
   0x1   :  { %v25_v0 = vld [vmem:[%s771_s1] sm:$0xff]  ;;  %v26_v1 = vld [vmem:[%s771_s1 + $0x8] sm:$0xff]  ;;  %v27_v2 = vld [vmem:[%s771_s1 + $0x10] sm:$0xff]  ;;  %506 = vmatprep.subr.bf16.mxu0 %v582_v3  ;;  %438 = vmatprep.mubr.msk.f32.mxu0 %vm583_vm0, %v584_v6 }
   0x2   :  { %v507_v4 = vpack.c.bf16 %v26_v1, %v25_v0  ;;  %v28_v5 = vld [vmem:[%s771_s1 + $0x18] sm:$0xff]  ;;  %v109_v7 = vld [vmem:[%s772_s2] sm:$0xff]  ;;  %512 = vmatprep.subr.bf16.mxu1 %v582_v3  ;;  %v110_v8 = vld [vmem:[%s772_s2 + $0x8] sm:$0xff]  ;;  %473 = vmatprep.mubr.msk.f32.mxu1 %vm583_vm0, %v584_v6 }
   0x3   :  { %v111_v9 = vld [vmem:[%s772_s2 + $0x10] sm:$0xff]  ;;  %v112_v10 = vld [vmem:[%s772_s2 + $0x18] sm:$0xff]  ;;  %v510_v11 = vpack.c.bf16 %v28_v5, %v27_v2  ;;  %v513_v12 = vpack.c.bf16 %v110_v8, %v109_v7  ;;  %v113_v14 = vld [vmem:[%s772_s2 + $0x20] sm:$0xff] }
   0x4   :  { %508 = vmatpush3.bf16.msra.mxu0 %v507_v4  ;;  %v516_v13 = vpack.c.bf16 %v112_v10, %v111_v9  ;;  %v114_v15 = vld [vmem:[%s772_s2 + $0x28] sm:$0xff] }
   0x5   :  { %509 = vmatprep.subr.bf16.mxu0 %v582_v3  ;;  %514 = vmatpush3.bf16.msra.mxu1 %v513_v12 }
   0x6   :  { %515 = vmatprep.subr.bf16.mxu1 %v582_v3 }
   0x7   :  { %11 = vsyncpa [#allocation3], 0  ;;  %v24_v16 = vld [vmem:[%s770_s0] sm:$0xff]  ;;  %vm34_vm1 = vcmask 261120   ;;  %v519_v17 = vpack.c.bf16 %v114_v15, %v113_v14  ;;  %v115_v18 = vld [vmem:[%s772_s2 + $0x30] sm:$0xff]  ;;  %vm214_vm2 = vcmask 523264  }
   0x8   :  { %511 = vmatpush3.bf16.msra.mxu0 %v510_v11  ;;  %v116_v19 = vld [vmem:[%s772_s2 + $0x38] sm:$0xff]  ;;  %v117_v21 = vld [vmem:[%s772_s2 + $0x40] sm:$0xff]  ;;  %v118_v22 = vld [vmem:[%s772_s2 + $0x48] sm:$0xff]  ;;  %s585_s16 = smov [#allocation2]   ;;  %vm371_vm3 = vcmask 130048  }
   0x9   :  { %536 = vmatprep.subr.bf16.mxu0 %v582_v3  ;;  %517 = vmatpush3.bf16.msra.mxu1 %v516_v13  ;;  %v522_v20 = vpack.c.bf16 %v116_v19, %v115_v18  ;;  %v525_v23 = vpack.c.bf16 %v118_v22, %v117_v21  ;;  %v119_v24 = vld [vmem:[%s772_s2 + $0x50] sm:$0xff]  ;;  %v120_v25 = vld [vmem:[%s772_s2 + $0x58] sm:$0xff]  ;;  %v121_v27 = vld [vmem:[%s772_s2 + $0x60] sm:$0xff]  ;;  %s379_s17 = sshll.u32 %s585_s16, 4  ;;  %s380_s17 = int_to_ptr.vmem [resolvable:$true] %s379_s17 }
   0xa   :  { %518 = vmatprep.subr.bf16.mxu1 %v582_v3  ;;  %v528_v26 = vpack.c.bf16 %v120_v25, %v119_v24  ;;  %v122_v28 = vld [vmem:[%s772_s2 + $0x68] sm:$0xff]  ;;  %v123_v30 = vld [vmem:[%s772_s2 + $0x70] sm:$0xff]  ;;  %v124_v31 = vld [vmem:[%s772_s2 + $0x78] sm:$0xff]  ;;  %p563_p1 = scmp.lt.s32.totalorder %s380_s17, %s380_s17 }
   0xb   :  { %439 = vmatmul.mubr.msk.f32.vlgmr.msra.gmra.mrb[0].mxu0 %vm34_vm1, %v24_v16  ;;  %v531_v29 = vpack.c.bf16 %v122_v28, %v121_v27  ;;  %v534_v32 = vpack.c.bf16 %v124_v31, %v123_v30  ;;  %v201_v33 = vld [vmem:[%s773_s3] sm:$0xff]  ;;  %v202_v34 = vld [vmem:[%s773_s3 + $0x8] sm:$0xff]  ;;  %v203_v35 = vld [vmem:[%s773_s3 + $0x10] sm:$0xff] }
   0xc   :  { %492 = vmatprep.mubr.msk.f32.mxu0 %vm583_vm0, %v584_v6  ;;  %v537_v36 = vpack.c.bf16 %v202_v34, %v201_v33  ;;  %v204_v37 = vld [vmem:[%s773_s3 + $0x18] sm:$0xff]  ;;  %v205_v39 = vld [vmem:[%s773_s3 + $0x20] sm:$0xff]  ;;  %v206_v40 = vld [vmem:[%s773_s3 + $0x28] sm:$0xff] }
   0xd   :  { %520 = vmatpush3.bf16.msra.mxu1 %v519_v17  ;;  %v540_v38 = vpack.c.bf16 %v204_v37, %v203_v35  ;;  %v543_v41 = vpack.c.bf16 %v206_v40, %v205_v39  ;;  %v387_v42 = vld [vmem:[%s775_s5] ss:$0 sm:$0xff]  ;;  %v207_v47 = vld [vmem:[%s773_s3 + $0x30] sm:$0xff]  ;;  %v208_v48 = vld [vmem:[%s773_s3 + $0x38] sm:$0xff] }
   0xe   :  { %521 = vmatprep.subr.bf16.mxu1 %v582_v3  ;;  %538 = vmatpush3.bf16.msra.mxu0 %v537_v36  ;;  %v546_v49 = vpack.c.bf16 %v208_v48, %v207_v47  ;;  %v389_v50 = vld [vmem:[%s775_s5 + $0x1] ss:$0 sm:$0xff]  ;;  %v290_v52 = vld [vmem:[%s774_s4 + $0x8] sm:$0xff]  ;;  %v291_v58 = vld [vmem:[%s774_s4 + $0x10] sm:$0xff] }
   0xf   :  { %539 = vmatprep.subr.bf16.mxu0 %v582_v3  ;;  %v289_v51 = vld [vmem:[%s774_s4] sm:$0xff]  ;;  %v292_v59 = vld [vmem:[%s774_s4 + $0x18] sm:$0xff]  ;;  %s558_s4 = scalar_lea.vmem %s380_s17, 128 }
  0x10   :  { %v549_v56 = vpack.c.bf16 %v290_v52, %v289_v51  ;;  %v552_v60 = vpack.c.bf16 %v292_v59, %v291_v58  ;;  %v390_v61 = vld [vmem:[%s775_s5 + $0x2] ss:$0 sm:$0xff]  ;;  %v392_v2 = vld [vmem:[%s775_s5 + $0x3] ss:$0 sm:$0xff]  ;;  %p559_p0 = scmp.ne.s32.totalorder %s380_s17, %s558_s4  ;;  %p564_p2 = scmp.lt.s32.totalorder %s558_s4, %s558_s4 }
  0x11   :  { %523 = vmatpush3.bf16.msra.mxu1 %v522_v20 }
  0x12   :  { %524 = vmatprep.subr.bf16.mxu1 %v582_v3  ;;  %541 = vmatpush3.bf16.msra.mxu0 %v540_v38  ;;  %p565_p3 = por %p564_p2, %p563_p1 }
  0x13   :  { %542 = vmatprep.subr.bf16.mxu0 %v582_v3 }
  0x14   :  { %p566_p4 = pnand %p565_p3, %p559_p0 }
  0x15   :  { %526 = vmatpush3.bf16.msra.mxu1 %v525_v23 }
  0x16   :  { %527 = vmatprep.subr.bf16.mxu1 %v582_v3  ;;  %544 = vmatpush3.bf16.msra.mxu0 %v543_v41 }
  0x17   :  { %545 = vmatprep.subr.bf16.mxu0 %v582_v3 }
  0x19   :  { %529 = vmatpush3.bf16.msra.mxu1 %v528_v26 }
  0x1a   :  { %530 = vmatprep.subr.bf16.mxu1 %v582_v3  ;;  %547 = vmatpush3.bf16.msra.mxu0 %v546_v49 }
  0x1b   :  { %548 = vmatprep.subr.bf16.mxu0 %v582_v3 }
  0x1d   :  { %532 = vmatpush3.bf16.msra.mxu1 %v531_v29 }
  0x1e   :  { %533 = vmatprep.subr.bf16.mxu1 %v582_v3 }
  0x21   :  { %535 = vmatpush3.bf16.msra.mxu1 %v534_v32 }
  0xde   :  { %v104_v43 = vpop.f32.mrb[0].mxu0 }
  0xdf   :  { %v105_v44 = vadd.f32 %v387_v42, %v104_v43  ;;  %v440_v45 = vpop.f32.mrb[1].mxu0 }
  0xe1   :  { %v108_v46 = vmax.f32 %v105_v44, 0.0 }
  0xe3   :  { %474 = vmatmul.mubr.f32.vlgmr.msra.gmra.mrb[0].mxu1 %v108_v46 }
 0x1b6   :  { %v196_v53 = vpop.f32.mrb[0].mxu1 }
 0x1b7   :  { %v197_v54 = vadd.f32 %v389_v50, %v196_v53  ;;  %v475_v55 = vpop.f32.mrb[1].mxu1 }
 0x1b9   :  { %v200_v57 = vmax.f32 %v197_v54, 0.0 }
 0x1bb   :  { %493 = vmatmul.mubr.msk.f32.vlgmr.msra.gmra.mrb[2].mxu0 %vm214_vm2, %v200_v57 }
 0x1bc   :  { %550 = vmatpush3.bf16.msra.mxu0 %v549_v56  ;;  %503 = vmatprep.mubr.msk.f32.mxu0 %vm583_vm0, %v584_v6 }
 0x1bd   :  { %551 = vmatprep.subr.bf16.mxu0 %v582_v3 }
 0x1c0   :  { %553 = vmatpush3.bf16.msra.mxu0 %v552_v60 }
 0x28e   :  { %v284_v62 = vpop.f32.mrb[2].mxu0 }
 0x28f   :  { %v285_v63 = vadd.f32 %v390_v61, %v284_v62  ;;  %v494_v0 = vpop.f32.mrb[3].mxu0 }
 0x291   :  { %v288_v1 = vmax.f32 %v285_v63, 0.0 }
 0x293   :  { %504 = vmatmul.mubr.msk.f32.vlgmr.msra.gmra.mrb[4].mxu0 %vm34_vm1, %v288_v1 }
 0x366   :  { %v367_v3 = vpop.f32.mrb[4].mxu0 }
 0x367   :  { %v368_v4 = vadd.f32 %v392_v2, %v367_v3  ;;  %v505_v5 = vpop.f32.mrb[5].mxu0 }
 0x369   :  { %372 = vst.msk [vmem:[#allocation2] sm:$0xff] %vm371_vm3, %v368_v4 }
 0x36a   :  { %569 = shalt.err (!%p566_p4)
}
 0x36b   :  { %s570_s2 = scalar_lea.hbm %s776_s6, 128 }
 0x36c   :  { %p571_p5 = scmp.ne.s32.totalorder %s776_s6, %s570_s2  ;;  %p574_p6 = scmp.lt.u32.totalorder %s570_s2, %s776_s6 }
 0x36e   :  { %p576_p7 = pnand %p574_p6, %p571_p5 }
 0x370   :  { %579 = shalt.err (!%p576_p7)
}
 0x371   :  { %382 = dma.vmem_to_hbm [thread:$0]  %s380_s17, 128, %s776_s6, [#allocation3]  }
 0x372   :  { %580 = dma.done.wait [#allocation3], 128  }
 0x373   :  { %581 = vsyncadd [#allocation3], 4294967168 }
 0x374   :  { %386 = vsyncpa [#allocation3], 1 }

</bundles_post_ra>
